<compile_context>
chip_gen: v6e
topology: v6e:2x2x1
jax: 0.10.0
libtpu: 0.0.40
codegen_flags: <defaults>
</compile_context>

<pallas_src>
import jax
import jax.numpy as jnp
from jax.experimental import pallas as pl
from jax.experimental.pallas import tpu as pltpu

LEAKY_SLOPE = 0.1   # options.leaky_relu = True
BN_EPS = 1e-5       # options.bn_eps


def _act(v, neg_slope=LEAKY_SLOPE):
    return jnp.where(v > 0, v, neg_slope * v)


def _tap_offsets(W):
    # Raster order matching HWIO weights: tap k = ky*3 + kx, dy = ky-1, dx = kx-1.
    return [((ky - 1) * W + (kx - 1)) for ky in range(3) for kx in range(3)]


def _tap_masks(N, H, W):
    """(9, N*H*W) f32 validity mask per tap (zero where the 3x3 source pixel
    falls outside the image -> also kills every roll wrap-around / cross-image
    contamination)."""
    HW = H * W
    NP = N * HW
    idx = jnp.arange(NP, dtype=jnp.int32)
    pix = idx % HW
    yy = pix // W
    xx = pix % W
    rows = []
    for ky in range(3):
        for kx in range(3):
            dy, dx = ky - 1, kx - 1
            ok = ((yy + dy >= 0) & (yy + dy < H) &
                  (xx + dx >= 0) & (xx + dx < W))
            rows.append(ok)
    return jnp.stack(rows, axis=0).astype(jnp.float32)


def _make_block_kernel(N, H, W, C, neg_slope):
    NP = N * H * W
    shifts = _tap_offsets(W)                     # dy*W + dx per tap

    def kernel(x_ref, m_ref, w1_ref, b1_ref, w2_ref, b2_ref, out_ref):
        x = x_ref[...]                           # (C, N*H*W) f32, channels-in-sublanes
        m = m_ref[...]                           # (9, N*H*W) f32 tap masks

        def conv(a, w_ref, b_ref):
            # Stack the 9 shifted+masked taps along sublanes -> one K=9*C matmul.
            cols = []
            for t, s in enumerate(shifts):
                if s == 0:
                    shifted = a
                else:
                    # dst[p] = a[p + s]  (circular; wraps are masked to zero)
                    shifted = pltpu.roll(a, shift=(-s) % NP, axis=1)
                cols.append(shifted * m[t:t + 1, :])
            patches = jnp.concatenate(cols, axis=0)          # (9*C, N*H*W)
            y = jnp.dot(w_ref[...], patches,                 # (C, 9*C) @ (9*C, NP)
                        preferred_element_type=jnp.float32)  # -> (C, N*H*W)
            return y + b_ref[...]                            # folded conv-bias + BN shift

        s1 = _act(conv(x, w1_ref, b1_ref), neg_slope)        # conv_lower + BN + lrelu
        s2 = conv(s1, w2_ref, b2_ref)                        # conv_upper + BN (no relu)
        out = _act(s2 + x, neg_slope)                        # residual + final lrelu
        out_ref[...] = out.astype(out_ref.dtype)

    return kernel


def fold_bn(bias, gamma, beta, mean, var, eps=BN_EPS):
    """Fold conv bias + eval-mode BatchNorm into per-channel scale/shift."""
    scale = gamma / jnp.sqrt(var + eps)
    shift = (bias - mean) * scale + beta
    return scale, shift


def pack_params(raw, C):
    """Repack weights to (C_out, 9*C_in) with the BN scale folded in."""
    s1, sh1 = fold_bn(raw["b1"], raw["g1"], raw["be1"], raw["mean1"], raw["var1"])
    s2, sh2 = fold_bn(raw["b2"], raw["g2"], raw["be2"], raw["mean2"], raw["var2"])

    def pack_w(w9, scale):
        # w9: (9, C_in, C_out) tap-major  ->  (C_out, 9*C_in), scale folded.
        return jnp.transpose(w9, (2, 0, 1)).reshape(C, 9 * C) * scale[:, None]

    return {"w1p": pack_w(raw["w1"], s1), "shift1": sh1[:, None],
            "w2p": pack_w(raw["w2"], s2), "shift2": sh2[:, None]}


def block_forward(x_nchw, p):
    """Pallas implementation of Block.forward.  x_nchw: (N, C, H, W)."""
    N, C, H, W = x_nchw.shape
    NP = N * H * W

    # Layout plumbing only: channels -> sublanes, flattened spatial -> lanes.
    x_cf = jnp.transpose(x_nchw, (1, 0, 2, 3)).reshape(C, NP)
    masks = _tap_masks(N, H, W)

    kernel = _make_block_kernel(N, H, W, C, LEAKY_SLOPE)

    out_cf = pl.pallas_call(
        kernel,
        out_shape=jax.ShapeDtypeStruct((C, NP), jnp.float32),
        grid=(1,),
        in_specs=[
            pl.BlockSpec((C, NP), lambda i: (0, 0)),       # activations
            pl.BlockSpec((9, NP), lambda i: (0, 0)),       # tap masks
            pl.BlockSpec((C, 9 * C), lambda i: (0, 0)),    # w1 packed
            pl.BlockSpec((C, 1), lambda i: (0, 0)),        # shift1
            pl.BlockSpec((C, 9 * C), lambda i: (0, 0)),    # w2 packed
            pl.BlockSpec((C, 1), lambda i: (0, 0)),        # shift2
        ],
        out_specs=pl.BlockSpec((C, NP), lambda i: (0, 0)),
        compiler_params=pltpu.CompilerParams(
            dimension_semantics=("arbitrary",)),
    )(x_cf, masks, p["w1p"], p["shift1"], p["w2p"], p["shift2"])

    return jnp.transpose(out_cf.reshape(C, N, H, W), (1, 0, 2, 3))


# ------------------------- pure-JAX reference -------------------------------

def _conv_ref(x_nhwc, w9, C):
    w_hwio = w9.reshape(3, 3, C, C)
    return jax.lax.conv_general_dilated(
        x_nhwc, w_hwio, window_strides=(1, 1), padding="SAME",
        dimension_numbers=("NHWC", "HWIO", "NHWC"),
        precision=jax.lax.Precision.HIGHEST)


def block_ref(x_nchw, raw):
    C = x_nchw.shape[1]
    x = jnp.transpose(x_nchw, (0, 2, 3, 1))                    # NHWC
    y = _conv_ref(x, raw["w1"], C) + raw["b1"]
    y = (y - raw["mean1"]) / jnp.sqrt(raw["var1"] + BN_EPS) * raw["g1"] + raw["be1"]
    y = _act(y)
    z = _conv_ref(y, raw["w2"], C) + raw["b2"]
    z = (z - raw["mean2"]) / jnp.sqrt(raw["var2"] + BN_EPS) * raw["g2"] + raw["be2"]
    z = _act(z + x)
    return jnp.transpose(z, (0, 3, 1, 2))                      # back to NCHW


# ---------------------------------- main -------------------------------------

if __name__ == "__main__":
    N, C, H, W = 2, 8, 16, 16       # small synthetic shapes (options.dim = 8)

    key = jax.random.PRNGKey(0)
    keys = jax.random.split(key, 13)

    x = jax.random.normal(keys[0], (N, C, H, W), jnp.float32)   # NCHW like PyTorch

    raw = {
        "w1": 0.1 * jax.random.normal(keys[1], (9, C, C), jnp.float32),
        "b1": 0.1 * jax.random.normal(keys[2], (C,), jnp.float32),
        "g1": 1.0 + 0.1 * jax.random.normal(keys[3], (C,), jnp.float32),
        "be1": 0.1 * jax.random.normal(keys[4], (C,), jnp.float32),
        "mean1": 0.1 * jax.random.normal(keys[5], (C,), jnp.float32),
        "var1": 0.5 + jax.random.uniform(keys[6], (C,), jnp.float32),
        "w2": 0.1 * jax.random.normal(keys[7], (9, C, C), jnp.float32),
        "b2": 0.1 * jax.random.normal(keys[8], (C,), jnp.float32),
        "g2": 1.0 + 0.1 * jax.random.normal(keys[9], (C,), jnp.float32),
        "be2": 0.1 * jax.random.normal(keys[10], (C,), jnp.float32),
        "mean2": 0.1 * jax.random.normal(keys[11], (C,), jnp.float32),
        "var2": 0.5 + jax.random.uniform(keys[12], (C,), jnp.float32),
    }

    params = pack_params(raw, C)

    out = jax.block_until_ready(block_forward(x, params))
    ref = jax.block_until_ready(block_ref(x, raw))

    assert out.shape == (N, C, H, W)
    assert jnp.allclose(out, ref, rtol=1e-3, atol=1e-3), (
        float(jnp.max(jnp.abs(out - ref))))

    print("KERNEL_OK")
</pallas_src>

<mosaic_0001>
module attributes {stable_mosaic.version = 11 : i64} {
  func.func @kernel(%arg0: i32, %arg1: memref<8x512xf32, #tpu.memory_space<vmem>>, %arg2: memref<9x512xf32, #tpu.memory_space<vmem>>, %arg3: memref<8x72xf32, #tpu.memory_space<vmem>>, %arg4: memref<8x1xf32, #tpu.memory_space<vmem>>, %arg5: memref<8x72xf32, #tpu.memory_space<vmem>>, %arg6: memref<8x1xf32, #tpu.memory_space<vmem>>, %arg7: memref<8x512xf32, #tpu.memory_space<vmem>>) attributes {dimension_semantics = [#tpu.dimension_semantics<arbitrary>], iteration_bounds = array<i64: 1>, scalar_prefetch = 0 : i64, scratch_operands = 0 : i64, tpu.core_type = #tpu.core_type<tc>, window_params = [{pipeline_mode = #tpu.pipeline_mode<synchronous>, transform_indices = @transform_0, window_bounds = array<i64: 8, 512>}, {pipeline_mode = #tpu.pipeline_mode<synchronous>, transform_indices = @transform_1, window_bounds = array<i64: 9, 512>}, {pipeline_mode = #tpu.pipeline_mode<synchronous>, transform_indices = @transform_2, window_bounds = array<i64: 8, 72>}, {pipeline_mode = #tpu.pipeline_mode<synchronous>, transform_indices = @transform_3, window_bounds = array<i64: 8, 1>}, {pipeline_mode = #tpu.pipeline_mode<synchronous>, transform_indices = @transform_4, window_bounds = array<i64: 8, 72>}, {pipeline_mode = #tpu.pipeline_mode<synchronous>, transform_indices = @transform_5, window_bounds = array<i64: 8, 1>}, {pipeline_mode = #tpu.pipeline_mode<synchronous>, transform_indices = @transform_6, window_bounds = array<i64: 8, 512>}]} {
    %c0 = arith.constant 0 : index
    %c0_0 = arith.constant 0 : index
    %0 = vector.load %arg1[%c0, %c0_0] : memref<8x512xf32, #tpu.memory_space<vmem>>, vector<8x512xf32>
    %c0_1 = arith.constant 0 : index
    %c0_2 = arith.constant 0 : index
    %1 = vector.load %arg2[%c0_1, %c0_2] : memref<9x512xf32, #tpu.memory_space<vmem>>, vector<9x512xf32>
    %c17_i32 = arith.constant 17 : i32
    %2 = tpu.dynamic_rotate %0 by %c17_i32 dim 1 : vector<8x512xf32>, i32 -> vector<8x512xf32>
    %3 = vector.extract_strided_slice %1 {offsets = [0, 0], sizes = [1, 512], strides = [1, 1]} : vector<9x512xf32> to vector<1x512xf32>
    %4 = vector.broadcast %3 : vector<1x512xf32> to vector<8x512xf32>
    %5 = arith.mulf %2, %4 : vector<8x512xf32>
    %c16_i32 = arith.constant 16 : i32
    %6 = tpu.dynamic_rotate %0 by %c16_i32 dim 1 : vector<8x512xf32>, i32 -> vector<8x512xf32>
    %7 = vector.extract_strided_slice %1 {offsets = [1, 0], sizes = [1, 512], strides = [1, 1]} : vector<9x512xf32> to vector<1x512xf32>
    %8 = vector.broadcast %7 : vector<1x512xf32> to vector<8x512xf32>
    %9 = arith.mulf %6, %8 : vector<8x512xf32>
    %c15_i32 = arith.constant 15 : i32
    %10 = tpu.dynamic_rotate %0 by %c15_i32 dim 1 : vector<8x512xf32>, i32 -> vector<8x512xf32>
    %11 = vector.extract_strided_slice %1 {offsets = [2, 0], sizes = [1, 512], strides = [1, 1]} : vector<9x512xf32> to vector<1x512xf32>
    %12 = vector.broadcast %11 : vector<1x512xf32> to vector<8x512xf32>
    %13 = arith.mulf %10, %12 : vector<8x512xf32>
    %c1_i32 = arith.constant 1 : i32
    %14 = tpu.dynamic_rotate %0 by %c1_i32 dim 1 : vector<8x512xf32>, i32 -> vector<8x512xf32>
    %15 = vector.extract_strided_slice %1 {offsets = [3, 0], sizes = [1, 512], strides = [1, 1]} : vector<9x512xf32> to vector<1x512xf32>
    %16 = vector.broadcast %15 : vector<1x512xf32> to vector<8x512xf32>
    %17 = arith.mulf %14, %16 : vector<8x512xf32>
    %18 = vector.extract_strided_slice %1 {offsets = [4, 0], sizes = [1, 512], strides = [1, 1]} : vector<9x512xf32> to vector<1x512xf32>
    %19 = vector.broadcast %18 : vector<1x512xf32> to vector<8x512xf32>
    %20 = arith.mulf %0, %19 : vector<8x512xf32>
    %c511_i32 = arith.constant 511 : i32
    %21 = tpu.dynamic_rotate %0 by %c511_i32 dim 1 : vector<8x512xf32>, i32 -> vector<8x512xf32>
    %22 = vector.extract_strided_slice %1 {offsets = [5, 0], sizes = [1, 512], strides = [1, 1]} : vector<9x512xf32> to vector<1x512xf32>
    %23 = vector.broadcast %22 : vector<1x512xf32> to vector<8x512xf32>
    %24 = arith.mulf %21, %23 : vector<8x512xf32>
    %c497_i32 = arith.constant 497 : i32
    %25 = tpu.dynamic_rotate %0 by %c497_i32 dim 1 : vector<8x512xf32>, i32 -> vector<8x512xf32>
    %26 = vector.extract_strided_slice %1 {offsets = [6, 0], sizes = [1, 512], strides = [1, 1]} : vector<9x512xf32> to vector<1x512xf32>
    %27 = vector.broadcast %26 : vector<1x512xf32> to vector<8x512xf32>
    %28 = arith.mulf %25, %27 : vector<8x512xf32>
    %c496_i32 = arith.constant 496 : i32
    %29 = tpu.dynamic_rotate %0 by %c496_i32 dim 1 : vector<8x512xf32>, i32 -> vector<8x512xf32>
    %30 = vector.extract_strided_slice %1 {offsets = [7, 0], sizes = [1, 512], strides = [1, 1]} : vector<9x512xf32> to vector<1x512xf32>
    %31 = vector.broadcast %30 : vector<1x512xf32> to vector<8x512xf32>
    %32 = arith.mulf %29, %31 : vector<8x512xf32>
    %c495_i32 = arith.constant 495 : i32
    %33 = tpu.dynamic_rotate %0 by %c495_i32 dim 1 : vector<8x512xf32>, i32 -> vector<8x512xf32>
    %34 = vector.extract_strided_slice %1 {offsets = [8, 0], sizes = [1, 512], strides = [1, 1]} : vector<9x512xf32> to vector<1x512xf32>
    %35 = vector.broadcast %34 : vector<1x512xf32> to vector<8x512xf32>
    %36 = arith.mulf %33, %35 : vector<8x512xf32>
    %37 = tpu.concatenate %5, %9, %13, %17, %20, %24, %28, %32, %36 in 0 : vector<8x512xf32>, vector<8x512xf32>, vector<8x512xf32>, vector<8x512xf32>, vector<8x512xf32>, vector<8x512xf32>, vector<8x512xf32>, vector<8x512xf32>, vector<8x512xf32> -> vector<72x512xf32>
    %c0_3 = arith.constant 0 : index
    %c0_4 = arith.constant 0 : index
    %38 = vector.load %arg3[%c0_3, %c0_4] : memref<8x72xf32, #tpu.memory_space<vmem>>, vector<8x72xf32>
    %cst = arith.constant dense<0.000000e+00> : vector<8x512xf32>
    %39 = tpu.matmul %38, %37, %cst {dimension_numbers = #tpu.dot_dimension_numbers<[1], [0], [0], [1], [0, 0, 1, 1], [], []>} : vector<8x72xf32>, vector<72x512xf32>, vector<8x512xf32> -> vector<8x512xf32>
    %c0_5 = arith.constant 0 : index
    %c0_6 = arith.constant 0 : index
    %40 = vector.load %arg4[%c0_5, %c0_6] : memref<8x1xf32, #tpu.memory_space<vmem>>, vector<8x1xf32>
    %41 = vector.broadcast %40 : vector<8x1xf32> to vector<8x512xf32>
    %42 = arith.addf %39, %41 : vector<8x512xf32>
    %cst_7 = arith.constant 0.000000e+00 : f32
    %43 = vector.broadcast %cst_7 : f32 to vector<8x512xf32>
    %44 = arith.cmpf ogt, %42, %43 : vector<8x512xf32>
    %cst_8 = arith.constant 1.000000e-01 : f32
    %45 = vector.broadcast %cst_8 : f32 to vector<8x512xf32>
    %46 = arith.mulf %45, %42 : vector<8x512xf32>
    %47 = arith.select %44, %42, %46 : vector<8x512xi1>, vector<8x512xf32>
    %c17_i32_9 = arith.constant 17 : i32
    %48 = tpu.dynamic_rotate %47 by %c17_i32_9 dim 1 : vector<8x512xf32>, i32 -> vector<8x512xf32>
    %49 = vector.extract_strided_slice %1 {offsets = [0, 0], sizes = [1, 512], strides = [1, 1]} : vector<9x512xf32> to vector<1x512xf32>
    %50 = vector.broadcast %49 : vector<1x512xf32> to vector<8x512xf32>
    %51 = arith.mulf %48, %50 : vector<8x512xf32>
    %c16_i32_10 = arith.constant 16 : i32
    %52 = tpu.dynamic_rotate %47 by %c16_i32_10 dim 1 : vector<8x512xf32>, i32 -> vector<8x512xf32>
    %53 = vector.extract_strided_slice %1 {offsets = [1, 0], sizes = [1, 512], strides = [1, 1]} : vector<9x512xf32> to vector<1x512xf32>
    %54 = vector.broadcast %53 : vector<1x512xf32> to vector<8x512xf32>
    %55 = arith.mulf %52, %54 : vector<8x512xf32>
    %c15_i32_11 = arith.constant 15 : i32
    %56 = tpu.dynamic_rotate %47 by %c15_i32_11 dim 1 : vector<8x512xf32>, i32 -> vector<8x512xf32>
    %57 = vector.extract_strided_slice %1 {offsets = [2, 0], sizes = [1, 512], strides = [1, 1]} : vector<9x512xf32> to vector<1x512xf32>
    %58 = vector.broadcast %57 : vector<1x512xf32> to vector<8x512xf32>
    %59 = arith.mulf %56, %58 : vector<8x512xf32>
    %c1_i32_12 = arith.constant 1 : i32
    %60 = tpu.dynamic_rotate %47 by %c1_i32_12 dim 1 : vector<8x512xf32>, i32 -> vector<8x512xf32>
    %61 = vector.extract_strided_slice %1 {offsets = [3, 0], sizes = [1, 512], strides = [1, 1]} : vector<9x512xf32> to vector<1x512xf32>
    %62 = vector.broadcast %61 : vector<1x512xf32> to vector<8x512xf32>
    %63 = arith.mulf %60, %62 : vector<8x512xf32>
    %64 = vector.extract_strided_slice %1 {offsets = [4, 0], sizes = [1, 512], strides = [1, 1]} : vector<9x512xf32> to vector<1x512xf32>
    %65 = vector.broadcast %64 : vector<1x512xf32> to vector<8x512xf32>
    %66 = arith.mulf %47, %65 : vector<8x512xf32>
    %c511_i32_13 = arith.constant 511 : i32
    %67 = tpu.dynamic_rotate %47 by %c511_i32_13 dim 1 : vector<8x512xf32>, i32 -> vector<8x512xf32>
    %68 = vector.extract_strided_slice %1 {offsets = [5, 0], sizes = [1, 512], strides = [1, 1]} : vector<9x512xf32> to vector<1x512xf32>
    %69 = vector.broadcast %68 : vector<1x512xf32> to vector<8x512xf32>
    %70 = arith.mulf %67, %69 : vector<8x512xf32>
    %c497_i32_14 = arith.constant 497 : i32
    %71 = tpu.dynamic_rotate %47 by %c497_i32_14 dim 1 : vector<8x512xf32>, i32 -> vector<8x512xf32>
    %72 = vector.extract_strided_slice %1 {offsets = [6, 0], sizes = [1, 512], strides = [1, 1]} : vector<9x512xf32> to vector<1x512xf32>
    %73 = vector.broadcast %72 : vector<1x512xf32> to vector<8x512xf32>
    %74 = arith.mulf %71, %73 : vector<8x512xf32>
    %c496_i32_15 = arith.constant 496 : i32
    %75 = tpu.dynamic_rotate %47 by %c496_i32_15 dim 1 : vector<8x512xf32>, i32 -> vector<8x512xf32>
    %76 = vector.extract_strided_slice %1 {offsets = [7, 0], sizes = [1, 512], strides = [1, 1]} : vector<9x512xf32> to vector<1x512xf32>
    %77 = vector.broadcast %76 : vector<1x512xf32> to vector<8x512xf32>
    %78 = arith.mulf %75, %77 : vector<8x512xf32>
    %c495_i32_16 = arith.constant 495 : i32
    %79 = tpu.dynamic_rotate %47 by %c495_i32_16 dim 1 : vector<8x512xf32>, i32 -> vector<8x512xf32>
    %80 = vector.extract_strided_slice %1 {offsets = [8, 0], sizes = [1, 512], strides = [1, 1]} : vector<9x512xf32> to vector<1x512xf32>
    %81 = vector.broadcast %80 : vector<1x512xf32> to vector<8x512xf32>
    %82 = arith.mulf %79, %81 : vector<8x512xf32>
    %83 = tpu.concatenate %51, %55, %59, %63, %66, %70, %74, %78, %82 in 0 : vector<8x512xf32>, vector<8x512xf32>, vector<8x512xf32>, vector<8x512xf32>, vector<8x512xf32>, vector<8x512xf32>, vector<8x512xf32>, vector<8x512xf32>, vector<8x512xf32> -> vector<72x512xf32>
    %c0_17 = arith.constant 0 : index
    %c0_18 = arith.constant 0 : index
    %84 = vector.load %arg5[%c0_17, %c0_18] : memref<8x72xf32, #tpu.memory_space<vmem>>, vector<8x72xf32>
    %cst_19 = arith.constant dense<0.000000e+00> : vector<8x512xf32>
    %85 = tpu.matmul %84, %83, %cst_19 {dimension_numbers = #tpu.dot_dimension_numbers<[1], [0], [0], [1], [0, 0, 1, 1], [], []>} : vector<8x72xf32>, vector<72x512xf32>, vector<8x512xf32> -> vector<8x512xf32>
    %c0_20 = arith.constant 0 : index
    %c0_21 = arith.constant 0 : index
    %86 = vector.load %arg6[%c0_20, %c0_21] : memref<8x1xf32, #tpu.memory_space<vmem>>, vector<8x1xf32>
    %87 = vector.broadcast %86 : vector<8x1xf32> to vector<8x512xf32>
    %88 = arith.addf %85, %87 : vector<8x512xf32>
    %89 = arith.addf %88, %0 : vector<8x512xf32>
    %cst_22 = arith.constant 0.000000e+00 : f32
    %90 = vector.broadcast %cst_22 : f32 to vector<8x512xf32>
    %91 = arith.cmpf ogt, %89, %90 : vector<8x512xf32>
    %cst_23 = arith.constant 1.000000e-01 : f32
    %92 = vector.broadcast %cst_23 : f32 to vector<8x512xf32>
    %93 = arith.mulf %92, %89 : vector<8x512xf32>
    %94 = arith.select %91, %89, %93 : vector<8x512xi1>, vector<8x512xf32>
    %c0_24 = arith.constant 0 : index
    %c0_25 = arith.constant 0 : index
    %95 = vector.load %arg7[%c0_24, %c0_25] : memref<8x512xf32, #tpu.memory_space<vmem>>, vector<8x512xf32>
    tpu.vector_store %arg7[%c0_24, %c0_25], %94 {strides = array<i32>} : memref<8x512xf32, #tpu.memory_space<vmem>>, vector<8x512xf32>,
    return
  }
  func.func @transform_0(%arg0: i32) -> (i32, i32) {
    %c0_i32 = arith.constant 0 : i32
    %c0_i32_0 = arith.constant 0 : i32
    %c0_i32_1 = arith.constant 0 : i32
    return %c0_i32, %c0_i32_0 : i32, i32
  }
  func.func @transform_1(%arg0: i32) -> (i32, i32) {
    %c0_i32 = arith.constant 0 : i32
    %c0_i32_0 = arith.constant 0 : i32
    %c0_i32_1 = arith.constant 0 : i32
    return %c0_i32, %c0_i32_0 : i32, i32
  }
  func.func @transform_2(%arg0: i32) -> (i32, i32) {
    %c0_i32 = arith.constant 0 : i32
    %c0_i32_0 = arith.constant 0 : i32
    %c0_i32_1 = arith.constant 0 : i32
    return %c0_i32, %c0_i32_0 : i32, i32
  }
  func.func @transform_3(%arg0: i32) -> (i32, i32) {
    %c0_i32 = arith.constant 0 : i32
    %c0_i32_0 = arith.constant 0 : i32
    %c0_i32_1 = arith.constant 0 : i32
    return %c0_i32, %c0_i32_0 : i32, i32
  }
  func.func @transform_4(%arg0: i32) -> (i32, i32) {
    %c0_i32 = arith.constant 0 : i32
    %c0_i32_0 = arith.constant 0 : i32
    %c0_i32_1 = arith.constant 0 : i32
    return %c0_i32, %c0_i32_0 : i32, i32
  }
  func.func @transform_5(%arg0: i32) -> (i32, i32) {
    %c0_i32 = arith.constant 0 : i32
    %c0_i32_0 = arith.constant 0 : i32
    %c0_i32_1 = arith.constant 0 : i32
    return %c0_i32, %c0_i32_0 : i32, i32
  }
  func.func @transform_6(%arg0: i32) -> (i32, i32) {
    %c0_i32 = arith.constant 0 : i32
    %c0_i32_0 = arith.constant 0 : i32
    %c0_i32_1 = arith.constant 0 : i32
    return %c0_i32, %c0_i32_0 : i32, i32
  }
}

</mosaic_0001>

<bundles_post_ra>
// kernel: tpu_custom_call.1
= control target key start
LH: loop header
LB: loop body
LE: loop exit
PB: predicated region body
PF: predicated region fallthrough
CT: control target
= control target key end

     0   :  { %11 = vsyncpa [#allocation3], 0  ;;  %s1490_s0 = inlined_call_operand.hbm [shape: f32[8,512], index: 0, kind: input, shape index: {}]   ;;  %s1491_s1 = inlined_call_operand.hbm [shape: f32[9,512], index: 1, kind: input, shape index: {}]   ;;  %s1492_s2 = inlined_call_operand.vmem [shape: f32[8,72], index: 2, kind: input, shape index: {}]   ;;  %s1493_s3 = inlined_call_operand.vmem [shape: f32[8,1], index: 3, kind: input, shape index: {}]   ;;  %s1494_s4 = inlined_call_operand.vmem [shape: f32[8,72], index: 4, kind: input, shape index: {}]   ;;  %s1495_s5 = inlined_call_operand.vmem [shape: f32[8,1], index: 5, kind: input, shape index: {}]   ;;  %s1496_s6 = inlined_call_operand.hbm [shape: f32[8,512], index: 6, kind: output, shape index: {}]  }
   0x1   :  { %12 = vsyncpa [#allocation6], 0 }
   0x2   :  { %13 = vsyncpa [#allocation4], 0  ;;  %s923_s21 = smov [#allocation2]   ;;  %s924_s23 = smov [#allocation5]  }
   0x3   :  { %s20_s22 = sshll.u32 %s923_s21, 4  ;;  %s29_s24 = sshll.u32 %s924_s23, 4  ;;  %s21_s22 = int_to_ptr.vmem [resolvable:$true] %s20_s22  ;;  %s30_s24 = int_to_ptr.vmem [resolvable:$true] %s29_s24 }
   0x4   :  { %s865_s25 = scalar_lea.vmem %s21_s22, 512  ;;  %p870_p1 = scmp.lt.s32.totalorder %s21_s22, %s21_s22 }
   0x5   :  { %p866_p0 = scmp.ne.s32.totalorder %s21_s22, %s865_s25  ;;  %p871_p2 = scmp.lt.s32.totalorder %s865_s25, %s865_s25 }
   0x7   :  { %p872_p3 = por %p871_p2, %p870_p1 }
   0x9   :  { %p873_p4 = pnand %p872_p3, %p866_p0 }
   0xb   :  { %876 = shalt.err (!%p873_p4)
}
   0xc   :  { %23 = dma.hbm_to_vmem [thread:$0]  %s1490_s0, 512, %s21_s22, [#allocation3]  }
   0xd   :  { %s885_s28 = scalar_lea.vmem %s30_s24, 1024  ;;  %p890_p6 = scmp.lt.s32.totalorder %s30_s24, %s30_s24 }
   0xe   :  { %p886_p5 = scmp.ne.s32.totalorder %s30_s24, %s885_s28  ;;  %p891_p7 = scmp.lt.s32.totalorder %s885_s28, %s885_s28 }
  0x10   :  { %p892_p8 = por %p891_p7, %p890_p6 }
  0x12   :  { %p893_p9 = pnand %p892_p8, %p886_p5 }
  0x14   :  { %896 = shalt.err (!%p893_p9)
}
  0x15   :  { %s925_s29 = smov 512   ;;  %s926_s30 = smov 32  }
  0x16   :  { %35 = dma.hbm_to_vmem [thread:$0]  %s1491_s1, 1024, %s30_s24, [#allocation6], %s925_s29, %s925_s29, %s926_s30  }
  0x17   :  { %917 = dma.done.wait [#allocation3], 512  }
  0x18   :  { %918 = vsyncadd [#allocation3], 4294966784 }
  0x19   :  { %919 = dma.done.wait [#allocation6], 1024  }
  0x1a   :  { %920 = vsyncadd [#allocation6], 4294966272  ;;  %v979_v0 = vld [vmem:[#allocation2 + $0x10] sm:$0xff]  ;;  %v981_v1 = vld [vmem:[#allocation2] sm:$0xff]  ;;  %s927_s0 = smov 111   ;;  %s928_s1 = smov 112   ;;  %v70_v7 = vlaneseq }
  0x1b   :  { %319 = vrot.lane.b32.xlu1 %v979_v0, %s927_s0  ;;  %315 = vrot.lane.b32.xlu0 %v981_v1, %s927_s0  ;;  %v987_v2 = vld [vmem:[#allocation2 + $0x18] sm:$0xff]  ;;  %v989_v3 = vld [vmem:[#allocation2 + $0x8] sm:$0xff]  ;;  %s929_s9 = smov 113   ;;  %s930_s10 = smov 127   ;;  %v934_v4 = vmov 0.0   ;;  %v935_v5 = vmov 0  }
  0x1c   :  { %s931_s11 = smov 1   ;;  %s932_s12 = smov 15   ;;  %423 = vmatprep.mubr.f32.mxu0 %v934_v4  ;;  %494 = vmatprep.mubr.f32.mxu1 %v934_v4  ;;  %v349_v6 = vld [vmem:[%s1493_s3] sm:$0xff]  ;;  %v1056_v8 = vand.u32 127, %v70_v7  ;;  %v1059_v11 = vld [vmem:[#allocation5 + $0x28] ss:$0 sm:$0xff] }
  0x1d   :  { %s933_s13 = smov 16   ;;  %856 = vset.pattern.permute.xlu0 %v935_v5  ;;  %s936_s14 = smov 17   ;;  %v1061_v12 = vshrl.u32 %v70_v7, 7  ;;  %v1063_v13 = vld [vmem:[#allocation5 + $0x38] ss:$0 sm:$0xff]  ;;  %v1084_v28 = vld [vmem:[#allocation5 + $0x8] sm:$0xff] }
  0x1e   :  { %vm323_vm0 = vcmp.lt.s32.totalorder %v1056_v8, 111  ;;  %v1065_v14 = vld [vmem:[#allocation5 + $0x20] ss:$0 sm:$0xff]  ;;  %v1067_v15 = vld [vmem:[#allocation5 + $0x30] ss:$0 sm:$0xff]  ;;  %v1082_v27 = vld [vmem:[#allocation5 + $0x18] sm:$0xff] }
  0x1f   :  { %321 = vrot.lane.b32.xlu1 %v987_v2, %s927_s0  ;;  %317 = vrot.lane.b32.xlu0 %v989_v3, %s927_s0  ;;  %v297_v26 = vsub.s32 7, %v1061_v12  ;;  %v1086_v29 = vld [vmem:[#allocation5 + $0x10] sm:$0xff]  ;;  %v1088_v31 = vld [vmem:[#allocation5] sm:$0xff]  ;;  %vm290_vm1 = vcmp.lt.s32.totalorder %v1056_v8, 112  ;;  %v264_v47 = vsub.s32 6, %v1061_v12  ;;  %vm257_vm2 = vcmp.lt.s32.totalorder %v1056_v8, 113 }
  0x20   :  { %v198_v60 = vsub.s32 4, %v1061_v12  ;;  %vm224_vm3 = vcmp.lt.s32.totalorder %v1056_v8, 127  ;;  %vm171_vm4 = vcmp.lt.s32.totalorder %v1056_v8, 1  ;;  %vm138_vm5 = vcmp.lt.s32.totalorder %v1056_v8, 15 }
  0x21   :  { %v1092_v33 = vrot.slane %v1082_v27, %v297_v26  ;;  %v1095_v34 = vrot.slane %v1084_v28, %v297_v26  ;;  %v1098_v35 = vrot.slane %v1086_v29, %v297_v26  ;;  %v1101_v36 = vrot.slane %v1088_v31, %v297_v26 }
  0x22   :  { %v1118_v50 = vrot.slane %v1082_v27, %v264_v47  ;;  %v1121_v51 = vrot.slane %v1084_v28, %v264_v47  ;;  %v1124_v52 = vrot.slane %v1086_v29, %v264_v47  ;;  %v1127_v53 = vrot.slane %v1088_v31, %v264_v47 }
  0x23   :  { %284 = vrot.lane.b32.xlu1 %v989_v3, %s928_s1  ;;  %282 = vrot.lane.b32.xlu0 %v981_v1, %s928_s1  ;;  %vm105_vm6 = vcmp.lt.s32.totalorder %v1056_v8, 16  ;;  %vm72_vm7 = vcmp.lt.s32.totalorder %v1056_v8, 17  ;;  %vm355_vm8 = vcmask 588800  }
  0x27   :  { %288 = vrot.lane.b32.xlu1 %v987_v2, %s928_s1  ;;  %286 = vrot.lane.b32.xlu0 %v979_v0, %s928_s1 }
  0x2b   :  { %251 = vrot.lane.b32.xlu1 %v989_v3, %s929_s9  ;;  %249 = vrot.lane.b32.xlu0 %v981_v1, %s929_s9 }
  0x2f   :  { %255 = vrot.lane.b32.xlu1 %v987_v2, %s929_s9  ;;  %253 = vrot.lane.b32.xlu0 %v979_v0, %s929_s9 }
  0x33   :  { %218 = vrot.lane.b32.xlu1 %v989_v3, %s930_s10  ;;  %216 = vrot.lane.b32.xlu0 %v981_v1, %s930_s10 }
  0x37   :  { %222 = vrot.lane.b32.xlu1 %v987_v2, %s930_s10  ;;  %220 = vrot.lane.b32.xlu0 %v979_v0, %s930_s10 }
  0x3b   :  { %165 = vrot.lane.b32.xlu1 %v989_v3, %s931_s11  ;;  %163 = vrot.lane.b32.xlu0 %v981_v1, %s931_s11 }
  0x3f   :  { %169 = vrot.lane.b32.xlu1 %v987_v2, %s931_s11  ;;  %167 = vrot.lane.b32.xlu0 %v979_v0, %s931_s11 }
  0x43   :  { %132 = vrot.lane.b32.xlu1 %v989_v3, %s932_s12  ;;  %130 = vrot.lane.b32.xlu0 %v981_v1, %s932_s12 }
  0x47   :  { %136 = vrot.lane.b32.xlu1 %v987_v2, %s932_s12  ;;  %134 = vrot.lane.b32.xlu0 %v979_v0, %s932_s12 }
  0x4b   :  { %99 = vrot.lane.b32.xlu1 %v989_v3, %s933_s13  ;;  %97 = vrot.lane.b32.xlu0 %v981_v1, %s933_s13 }
  0x4f   :  { %103 = vrot.lane.b32.xlu1 %v987_v2, %s933_s13  ;;  %101 = vrot.lane.b32.xlu0 %v979_v0, %s933_s13 }
  0x53   :  { %64 = vrot.lane.b32.xlu1 %v989_v3, %s936_s14  ;;  %62 = vrot.lane.b32.xlu0 %v981_v1, %s936_s14 }
  0x57   :  { %68 = vrot.lane.b32.xlu1 %v987_v2, %s936_s14  ;;  %66 = vrot.lane.b32.xlu0 %v979_v0, %s936_s14 }
  0x5b   :  { %352 = vperm.xlu0 %856, %v349_v6   ;;  %v231_v6 = vsub.s32 5, %v1061_v12 }
  0x8d   :  { %v320_v9 = vpop.permute.xlu1 %319  ;;  %v316_v10 = vpop.permute.xlu0 %315 }
  0x91   :  { %v322_v16 = vpop.permute.xlu1 %321  ;;  %v318_v17 = vpop.permute.xlu0 %317 }
  0x92   :  { %v324_v18 = vsel %vm323_vm0, %v320_v9, %v322_v16  ;;  %v326_v19 = vsel %vm323_vm0, %v316_v10, %v318_v17  ;;  %v325_v20 = vsel %vm323_vm0, %v318_v17, %v320_v9  ;;  %v327_v21 = vsel %vm323_vm0, %v322_v16, %v316_v10 }
  0x93   :  { %v345_v22 = vmul.f32 %v1059_v11, %v325_v20  ;;  %v347_v23 = vmul.f32 %v1063_v13, %v327_v21  ;;  %v344_v24 = vmul.f32 %v1065_v14, %v326_v19  ;;  %v346_v25 = vmul.f32 %v1067_v15, %v324_v18 }
  0x94   :  { %v178_v10 = vsub.s32 3, %v1061_v12  ;;  %v1146_v16 = vrot.slane %v1084_v28, %v198_v60  ;;  %v1149_v17 = vrot.slane %v1082_v27, %v231_v6  ;;  %v1152_v18 = vrot.slane %v1084_v28, %v231_v6 }
  0x95   :  { %v285_v30 = vpop.permute.xlu1 %284  ;;  %373 = vmatprep.subr.mxu0 %v345_v22  ;;  %444 = vmatprep.subr.mxu1 %v347_v23  ;;  %v283_v32 = vpop.permute.xlu0 %282  ;;  %v1155_v19 = vrot.slane %v1086_v29, %v231_v6  ;;  %v1158_v20 = vrot.slane %v1082_v27, %v198_v60  ;;  %v1161_v21 = vrot.slane %v1088_v31, %v231_v6 }
  0x96   :  { %374 = vmatpush1.msra.mxu0 %v344_v24  ;;  %445 = vmatpush1.msra.mxu1 %v346_v25  ;;  %v293_v37 = vsel %vm290_vm1, %v283_v32, %v285_v30  ;;  %v1164_v22 = vrot.slane %v1088_v31, %v198_v60  ;;  %v1167_v23 = vrot.slane %v1086_v29, %v198_v60 }
  0x97   :  { %v311_v46 = vmul.f32 %v1101_v36, %v293_v37 }
  0x99   :  { %v289_v38 = vpop.permute.xlu1 %288  ;;  %v287_v39 = vpop.permute.xlu0 %286 }
  0x9a   :  { %v294_v40 = vsel %vm290_vm1, %v289_v38, %v283_v32  ;;  %v291_v41 = vsel %vm290_vm1, %v287_v39, %v289_v38  ;;  %v292_v42 = vsel %vm290_vm1, %v285_v30, %v287_v39  ;;  %v1173_v30 = vrot.slane %v1084_v28, %v178_v10 }
  0x9b   :  { %v314_v43 = vmul.f32 %v1092_v33, %v294_v40  ;;  %v312_v44 = vmul.f32 %v1095_v34, %v292_v42  ;;  %v313_v45 = vmul.f32 %v1098_v35, %v291_v41  ;;  %v213_v39 = vmul.f32 %v1146_v16, %v989_v3 }
  0x9d   :  { %v252_v48 = vpop.permute.xlu1 %251  ;;  %375 = vmatprep.subr.mxu0 %v312_v44  ;;  %446 = vmatprep.subr.mxu1 %v314_v43  ;;  %v250_v49 = vpop.permute.xlu0 %249  ;;  %v215_v43 = vmul.f32 %v1158_v20, %v987_v2 }
  0x9e   :  { %376 = vmatpush1.msra.mxu0 %v311_v46  ;;  %447 = vmatpush1.msra.mxu1 %v313_v45  ;;  %v260_v54 = vsel %vm257_vm2, %v250_v49, %v252_v48  ;;  %v212_v45 = vmul.f32 %v1164_v22, %v981_v1  ;;  %v214_v46 = vmul.f32 %v1167_v23, %v979_v0 }
  0x9f   :  { %v278_v5 = vmul.f32 %v1127_v53, %v260_v54  ;;  %v1196_v54 = vrot.slane %v1088_v31, %v178_v10 }
  0xa1   :  { %v256_v55 = vpop.permute.xlu1 %255  ;;  %v254_v56 = vpop.permute.xlu0 %253 }
  0xa2   :  { %v261_v57 = vsel %vm257_vm2, %v256_v55, %v250_v49  ;;  %v258_v58 = vsel %vm257_vm2, %v254_v56, %v256_v55  ;;  %v259_v59 = vsel %vm257_vm2, %v252_v48, %v254_v56  ;;  %v1200_v56 = vrot.slane %v1086_v29, %v178_v10 }
  0xa3   :  { %v281_v61 = vmul.f32 %v1118_v50, %v261_v57  ;;  %v279_v62 = vmul.f32 %v1121_v51, %v259_v59  ;;  %v280_v63 = vmul.f32 %v1124_v52, %v258_v58  ;;  %v1203_v57 = vrot.slane %v1082_v27, %v178_v10 }
  0xa4   :  { %v145_v58 = vsub.s32 2, %v1061_v12 }
  0xa5   :  { %v219_v7 = vpop.permute.xlu1 %218  ;;  %377 = vmatprep.subr.mxu0 %v279_v62  ;;  %448 = vmatprep.subr.mxu1 %v281_v61  ;;  %v217_v9 = vpop.permute.xlu0 %216 }
  0xa6   :  { %378 = vmatpush1.msra.mxu0 %v278_v5  ;;  %449 = vmatpush1.msra.mxu1 %v280_v63  ;;  %v227_v24 = vsel %vm224_vm3, %v217_v9, %v219_v7 }
  0xa7   :  { %v245_v44 = vmul.f32 %v1161_v21, %v227_v24 }
  0xa9   :  { %v223_v25 = vpop.permute.xlu1 %222  ;;  %v221_v26 = vpop.permute.xlu0 %220 }
  0xaa   :  { %v228_v32 = vsel %vm224_vm3, %v223_v25, %v217_v9  ;;  %v225_v37 = vsel %vm224_vm3, %v221_v26, %v223_v25  ;;  %v226_v38 = vsel %vm224_vm3, %v219_v7, %v221_v26  ;;  %v1217_v9 = vrot.slane %v1084_v28, %v145_v58 }
  0xab   :  { %v248_v40 = vmul.f32 %v1149_v17, %v228_v32  ;;  %v246_v41 = vmul.f32 %v1152_v18, %v226_v38  ;;  %v247_v42 = vmul.f32 %v1155_v19, %v225_v37  ;;  %v1222_v26 = vrot.slane %v1088_v31, %v145_v58 }
  0xac   :  { %v1226_v37 = vrot.slane %v1086_v29, %v145_v58  ;;  %v1229_v38 = vrot.slane %v1082_v27, %v145_v58 }
  0xad   :  { %v166_v47 = vpop.permute.xlu1 %165  ;;  %379 = vmatprep.subr.mxu0 %v246_v41  ;;  %450 = vmatprep.subr.mxu1 %v248_v40  ;;  %v164_v48 = vpop.permute.xlu0 %163 }
  0xae   :  { %v174_v49 = vsel %vm171_vm4, %v164_v48, %v166_v47  ;;  %380 = vmatpush1.msra.mxu0 %v245_v44  ;;  %451 = vmatpush1.msra.mxu1 %v247_v42 }
  0xaf   :  { %v193_v55 = vmul.f32 %v1173_v30, %v174_v49  ;;  %381 = vmatprep.subr.mxu0 %v213_v39  ;;  %452 = vmatprep.subr.mxu1 %v215_v43  ;;  %v112_v39 = vsub.s32 1, %v1061_v12 }
  0xb0   :  { %382 = vmatpush1.msra.mxu0 %v212_v45  ;;  %453 = vmatpush1.msra.mxu1 %v214_v46 }
  0xb1   :  { %v170_v59 = vpop.permute.xlu1 %169  ;;  %v168_v60 = vpop.permute.xlu0 %167  ;;  %383 = vmatprep.subr.mxu0 %v193_v55 }
  0xb2   :  { %v175_v61 = vsel %vm171_vm4, %v170_v59, %v164_v48  ;;  %v172_v62 = vsel %vm171_vm4, %v168_v60, %v170_v59  ;;  %v173_v63 = vsel %vm171_vm4, %v166_v47, %v168_v60  ;;  %v1243_v48 = vrot.slane %v1084_v28, %v112_v39 }
  0xb3   :  { %v192_v5 = vmul.f32 %v1196_v54, %v175_v61  ;;  %v194_v6 = vmul.f32 %v1200_v56, %v173_v63  ;;  %v195_v7 = vmul.f32 %v1203_v57, %v172_v62  ;;  %v1248_v59 = vrot.slane %v1088_v31, %v112_v39 }
  0xb4   :  { %v1252_v61 = vrot.slane %v1086_v29, %v112_v39  ;;  %v1255_v62 = vrot.slane %v1082_v27, %v112_v39  ;;  %v79_v63 = vsub.s32 0, %v1061_v12 }
  0xb5   :  { %v133_v10 = vpop.permute.xlu1 %132  ;;  %454 = vmatprep.subr.mxu1 %v195_v7  ;;  %v131_v24 = vpop.permute.xlu0 %130  ;;  %384 = vmatpush1.msra.mxu0 %v192_v5 }
  0xb6   :  { %v141_v25 = vsel %vm138_vm5, %v131_v24, %v133_v10  ;;  %455 = vmatpush1.msra.mxu1 %v194_v6  ;;  %v1269_v39 = vrot.slane %v1084_v28, %v79_v63 }
  0xb7   :  { %v160_v32 = vmul.f32 %v1217_v9, %v141_v25 }
  0xb9   :  { %v137_v40 = vpop.permute.xlu1 %136  ;;  %v135_v41 = vpop.permute.xlu0 %134  ;;  %385 = vmatprep.subr.mxu0 %v160_v32 }
  0xba   :  { %v142_v42 = vsel %vm138_vm5, %v137_v40, %v131_v24  ;;  %v139_v43 = vsel %vm138_vm5, %v135_v41, %v137_v40  ;;  %v140_v44 = vsel %vm138_vm5, %v133_v10, %v135_v41 }
  0xbb   :  { %v159_v45 = vmul.f32 %v1222_v26, %v142_v42  ;;  %v161_v46 = vmul.f32 %v1226_v37, %v140_v44  ;;  %v162_v47 = vmul.f32 %v1229_v38, %v139_v43  ;;  %v1275_v44 = vrot.slane %v1088_v31, %v79_v63 }
  0xbd   :  { %v100_v49 = vpop.permute.xlu1 %99  ;;  %456 = vmatprep.subr.mxu1 %v162_v47  ;;  %v98_v55 = vpop.permute.xlu0 %97  ;;  %386 = vmatpush1.msra.mxu0 %v159_v45  ;;  %v1278_v45 = vrot.slane %v1086_v29, %v79_v63 }
  0xbe   :  { %v108_v58 = vsel %vm105_vm6, %v98_v55, %v100_v49  ;;  %457 = vmatpush1.msra.mxu1 %v161_v46  ;;  %v1281_v46 = vrot.slane %v1082_v27, %v79_v63  ;;  %v348_v27 = vld [vmem:[%s1492_s2] sm:$0xff] }
  0xbf   :  { %v127_v60 = vmul.f32 %v1243_v48, %v108_v58 }
  0xc1   :  { %v104_v5 = vpop.permute.xlu1 %103  ;;  %v102_v6 = vpop.permute.xlu0 %101  ;;  %387 = vmatprep.subr.mxu0 %v127_v60 }
  0xc2   :  { %v109_v7 = vsel %vm105_vm6, %v104_v5, %v98_v55  ;;  %v106_v10 = vsel %vm105_vm6, %v102_v6, %v104_v5  ;;  %v107_v24 = vsel %vm105_vm6, %v100_v49, %v102_v6 }
  0xc3   :  { %v126_v25 = vmul.f32 %v1248_v59, %v109_v7  ;;  %v128_v32 = vmul.f32 %v1252_v61, %v107_v24  ;;  %v129_v12 = vmul.f32 %v1255_v62, %v106_v10 }
  0xc5   :  { %v65_v40 = vpop.permute.xlu1 %64  ;;  %458 = vmatprep.subr.mxu1 %v129_v12  ;;  %v63_v41 = vpop.permute.xlu0 %62  ;;  %388 = vmatpush1.msra.mxu0 %v126_v25 }
  0xc6   :  { %v75_v42 = vsel %vm72_vm7, %v63_v41, %v65_v40  ;;  %459 = vmatpush1.msra.mxu1 %v128_v32 }
  0xc7   :  { %v94_v43 = vmul.f32 %v1269_v39, %v75_v42 }
  0xc9   :  { %v69_v28 = vpop.permute.xlu1 %68  ;;  %v67_v47 = vpop.permute.xlu0 %66  ;;  %389 = vmatprep.subr.mxu0 %v94_v43 }
  0xca   :  { %v76_v49 = vsel %vm72_vm7, %v69_v28, %v63_v41  ;;  %v73_v55 = vsel %vm72_vm7, %v67_v47, %v69_v28  ;;  %v74_v58 = vsel %vm72_vm7, %v65_v40, %v67_v47 }
  0xcb   :  { %v93_v31 = vmul.f32 %v1275_v44, %v76_v49  ;;  %v95_v29 = vmul.f32 %v1278_v45, %v74_v58  ;;  %v96_v60 = vmul.f32 %v1281_v46, %v73_v55  ;;  %v646_v55 = vld [vmem:[%s1495_s5] sm:$0xff] }
  0xcd   :  { %390 = vmatpush1.msra.mxu0 %v93_v31  ;;  %460 = vmatprep.subr.mxu1 %v96_v60 }
  0xce   :  { %837 = vmatmul.mubr.msk.f32.vlgmr.msra.gmra.mxu0 %vm355_vm8, %v348_v27  ;;  %461 = vmatpush1.msra.mxu1 %v95_v29 }
  0xcf   :  { %838 = vmatmul.mubr.msk.f32.vlgmr.msra.gmra.mxu1 %vm355_vm8, %v348_v27  ;;  %719 = vmatprep.mubr.f32.mxu0 %v934_v4 }
  0xd0   :  { %790 = vmatprep.mubr.f32.mxu1 %v934_v4 }
  0xd6   :  { %v353_v63 = vpop.permute.xlu0 %352 }
 0x18e   :  { %v425_v5 = vpop.f32.mrf.mxu0 }
 0x18f   :  { %v426_v6 = vadd.f32 %v425_v5, %v353_v63  ;;  %v496_v7 = vpop.f32.mrf.mxu1 }
 0x190   :  { %v497_v10 = vadd.f32 %v496_v7, %v353_v63  ;;  %v427_v24 = vpop.f32.mrf.mxu0 }
 0x191   :  { %vm501_vm9 = vcmp.gt.f32.partialorder %v426_v6, 0.0  ;;  %v505_v25 = vmul.f32 0.1, %v426_v6  ;;  %v428_v32 = vadd.f32 %v427_v24, %v353_v63  ;;  %v498_v12 = vpop.f32.mrf.mxu1 }
 0x192   :  { %vm503_vm10 = vcmp.gt.f32.partialorder %v497_v10, 0.0  ;;  %v507_v40 = vmul.f32 0.1, %v497_v10  ;;  %v499_v43 = vadd.f32 %v498_v12, %v353_v63 }
 0x193   :  { %v1299_v41 = vsel %vm501_vm9, %v426_v6, %v505_v25  ;;  %v506_v42 = vmul.f32 0.1, %v428_v32  ;;  %vm502_vm11 = vcmp.gt.f32.partialorder %v428_v32, 0.0 }
 0x194   :  { %v1301_v28 = vsel %vm503_vm10, %v497_v10, %v507_v40  ;;  %629 = vrot.lane.b32.xlu1 %v1299_v41, %s927_s0  ;;  %v508_v47 = vmul.f32 0.1, %v499_v43  ;;  %vm504_vm12 = vcmp.gt.f32.partialorder %v499_v43, 0.0 }
 0x195   :  { %633 = vrot.lane.b32.xlu0 %v1301_v28, %s927_s0  ;;  %v1307_v4 = vsel %vm502_vm11, %v428_v32, %v506_v42 }
 0x196   :  { %v1313_v49 = vsel %vm504_vm12, %v499_v43, %v508_v47 }
 0x198   :  { %631 = vrot.lane.b32.xlu1 %v1307_v4, %s927_s0 }
 0x199   :  { %613 = vrot.lane.b32.xlu0 %v1299_v41, %s928_s1 }
 0x19c   :  { %635 = vrot.lane.b32.xlu1 %v1313_v49, %s927_s0 }
 0x19d   :  { %617 = vrot.lane.b32.xlu0 %v1301_v28, %s928_s1 }
 0x1a0   :  { %615 = vrot.lane.b32.xlu1 %v1307_v4, %s928_s1 }
 0x1a1   :  { %597 = vrot.lane.b32.xlu0 %v1299_v41, %s929_s9 }
 0x1a4   :  { %619 = vrot.lane.b32.xlu1 %v1313_v49, %s928_s1 }
 0x1a5   :  { %601 = vrot.lane.b32.xlu0 %v1301_v28, %s929_s9 }
 0x1a8   :  { %599 = vrot.lane.b32.xlu1 %v1307_v4, %s929_s9 }
 0x1a9   :  { %581 = vrot.lane.b32.xlu0 %v1299_v41, %s930_s10 }
 0x1ac   :  { %603 = vrot.lane.b32.xlu1 %v1313_v49, %s929_s9 }
 0x1ad   :  { %585 = vrot.lane.b32.xlu0 %v1301_v28, %s930_s10 }
 0x1b0   :  { %583 = vrot.lane.b32.xlu1 %v1307_v4, %s930_s10 }
 0x1b1   :  { %561 = vrot.lane.b32.xlu0 %v1299_v41, %s931_s11 }
 0x1b4   :  { %587 = vrot.lane.b32.xlu1 %v1313_v49, %s930_s10 }
 0x1b5   :  { %565 = vrot.lane.b32.xlu0 %v1301_v28, %s931_s11 }
 0x1b8   :  { %563 = vrot.lane.b32.xlu1 %v1307_v4, %s931_s11 }
 0x1b9   :  { %545 = vrot.lane.b32.xlu0 %v1299_v41, %s932_s12 }
 0x1bc   :  { %567 = vrot.lane.b32.xlu1 %v1313_v49, %s931_s11 }
 0x1bd   :  { %549 = vrot.lane.b32.xlu0 %v1301_v28, %s932_s12 }
 0x1c0   :  { %547 = vrot.lane.b32.xlu1 %v1307_v4, %s932_s12 }
 0x1c1   :  { %529 = vrot.lane.b32.xlu0 %v1299_v41, %s933_s13 }
 0x1c4   :  { %551 = vrot.lane.b32.xlu1 %v1313_v49, %s932_s12 }
 0x1c5   :  { %533 = vrot.lane.b32.xlu0 %v1301_v28, %s933_s13 }
 0x1c8   :  { %531 = vrot.lane.b32.xlu1 %v1307_v4, %s933_s13 }
 0x1c9   :  { %513 = vrot.lane.b32.xlu0 %v1299_v41, %s936_s14 }
 0x1cc   :  { %535 = vrot.lane.b32.xlu1 %v1313_v49, %s933_s13 }
 0x1cd   :  { %517 = vrot.lane.b32.xlu0 %v1301_v28, %s936_s14 }
 0x1d0   :  { %515 = vrot.lane.b32.xlu1 %v1307_v4, %s936_s14 }
 0x1d1   :  { %649 = vperm.xlu0 %856, %v646_v55  }
 0x1d4   :  { %519 = vrot.lane.b32.xlu1 %v1313_v49, %s936_s14 }
 0x206   :  { %v630_v58 = vpop.permute.xlu1 %629 }
 0x207   :  { %v634_v31 = vpop.permute.xlu0 %633 }
 0x20a   :  { %v632_v29 = vpop.permute.xlu1 %631 }
 0x20b   :  { %v638_v60 = vsel %vm323_vm0, %v632_v29, %v634_v31  ;;  %v639_v27 = vsel %vm323_vm0, %v630_v58, %v632_v29  ;;  %v614_v63 = vpop.permute.xlu0 %613 }
 0x20c   :  { %v641_v5 = vmul.f32 %v1065_v14, %v639_v27  ;;  %v642_v6 = vmul.f32 %v1059_v11, %v638_v60 }
 0x20e   :  { %669 = vmatprep.subr.mxu0 %v642_v6  ;;  %v636_v7 = vpop.permute.xlu1 %635 }
 0x20f   :  { %v637_v10 = vsel %vm323_vm0, %v634_v31, %v636_v7  ;;  %v640_v24 = vsel %vm323_vm0, %v636_v7, %v630_v58  ;;  %v618_v25 = vpop.permute.xlu0 %617  ;;  %670 = vmatpush1.msra.mxu0 %v641_v5 }
 0x210   :  { %v643_v32 = vmul.f32 %v1067_v15, %v637_v10  ;;  %v644_v12 = vmul.f32 %v1063_v13, %v640_v24 }
 0x212   :  { %740 = vmatprep.subr.mxu1 %v644_v12  ;;  %v616_v40 = vpop.permute.xlu1 %615 }
 0x213   :  { %v622_v14 = vsel %vm290_vm1, %v616_v40, %v618_v25  ;;  %v623_v11 = vsel %vm290_vm1, %v614_v63, %v616_v40  ;;  %v598_v42 = vpop.permute.xlu0 %597  ;;  %741 = vmatpush1.msra.mxu1 %v643_v32 }
 0x214   :  { %v625_v43 = vmul.f32 %v623_v11, %v1101_v36  ;;  %v626_v47 = vmul.f32 %v622_v14, %v1095_v34 }
 0x216   :  { %671 = vmatprep.subr.mxu0 %v626_v47  ;;  %v620_v55 = vpop.permute.xlu1 %619 }
 0x217   :  { %v621_v15 = vsel %vm290_vm1, %v618_v25, %v620_v55  ;;  %v624_v13 = vsel %vm290_vm1, %v620_v55, %v614_v63  ;;  %v602_v58 = vpop.permute.xlu0 %601  ;;  %672 = vmatpush1.msra.mxu0 %v625_v43  ;;  %v577_v43 = vmul.f32 %v1299_v41, %v1164_v22 }
 0x218   :  { %v627_v31 = vmul.f32 %v621_v15, %v1098_v35  ;;  %v628_v29 = vmul.f32 %v624_v13, %v1092_v33  ;;  %v579_v15 = vmul.f32 %v1301_v28, %v1167_v23 }
 0x21a   :  { %742 = vmatprep.subr.mxu1 %v628_v29  ;;  %v600_v60 = vpop.permute.xlu1 %599 }
 0x21b   :  { %v606_v36 = vsel %vm257_vm2, %v600_v60, %v602_v58  ;;  %v607_v34 = vsel %vm257_vm2, %v598_v42, %v600_v60  ;;  %v582_v27 = vpop.permute.xlu0 %581  ;;  %743 = vmatpush1.msra.mxu1 %v627_v31 }
 0x21c   :  { %v609_v5 = vmul.f32 %v607_v34, %v1127_v53  ;;  %v610_v63 = vmul.f32 %v606_v36, %v1121_v51 }
 0x21e   :  { %673 = vmatprep.subr.mxu0 %v610_v63  ;;  %v604_v6 = vpop.permute.xlu1 %603 }
 0x21f   :  { %v605_v35 = vsel %vm257_vm2, %v602_v58, %v604_v6  ;;  %v608_v33 = vsel %vm257_vm2, %v604_v6, %v598_v42  ;;  %v586_v7 = vpop.permute.xlu0 %585  ;;  %674 = vmatpush1.msra.mxu0 %v609_v5 }
 0x220   :  { %v611_v10 = vmul.f32 %v605_v35, %v1124_v52  ;;  %v612_v24 = vmul.f32 %v608_v33, %v1118_v50  ;;  %v578_v52 = vmul.f32 %v1307_v4, %v1146_v16  ;;  %v580_v16 = vmul.f32 %v1313_v49, %v1158_v20 }
 0x222   :  { %744 = vmatprep.subr.mxu1 %v612_v24  ;;  %v584_v25 = vpop.permute.xlu1 %583 }
 0x223   :  { %v590_v53 = vsel %vm224_vm3, %v584_v25, %v586_v7  ;;  %v591_v51 = vsel %vm224_vm3, %v582_v27, %v584_v25  ;;  %v562_v32 = vpop.permute.xlu0 %561  ;;  %745 = vmatpush1.msra.mxu1 %v611_v10 }
 0x224   :  { %v593_v12 = vmul.f32 %v591_v51, %v1161_v21  ;;  %v594_v40 = vmul.f32 %v590_v53, %v1152_v18 }
 0x226   :  { %675 = vmatprep.subr.mxu0 %v594_v40  ;;  %v588_v14 = vpop.permute.xlu1 %587 }
 0x227   :  { %v589_v50 = vsel %vm224_vm3, %v586_v7, %v588_v14  ;;  %v592_v11 = vsel %vm224_vm3, %v588_v14, %v582_v27  ;;  %v566_v42 = vpop.permute.xlu0 %565  ;;  %676 = vmatpush1.msra.mxu0 %v593_v12 }
 0x228   :  { %v595_v21 = vmul.f32 %v589_v50, %v1155_v19  ;;  %v596_v18 = vmul.f32 %v592_v11, %v1149_v17  ;;  %677 = vmatprep.subr.mxu0 %v578_v52 }
 0x229   :  { %678 = vmatpush1.msra.mxu0 %v577_v43 }
 0x22a   :  { %746 = vmatprep.subr.mxu1 %v596_v18  ;;  %v564_v47 = vpop.permute.xlu1 %563 }
 0x22b   :  { %v571_v4 = vsel %vm171_vm4, %v562_v32, %v564_v47  ;;  %v546_v55 = vpop.permute.xlu0 %545  ;;  %747 = vmatpush1.msra.mxu1 %v595_v21  ;;  %v570_v17 = vsel %vm171_vm4, %v564_v47, %v566_v42 }
 0x22c   :  { %v574_v22 = vmul.f32 %v571_v4, %v1173_v30  ;;  %748 = vmatprep.subr.mxu1 %v580_v16  ;;  %v575_v30 = vmul.f32 %v570_v17, %v1200_v56 }
 0x22d   :  { %749 = vmatpush1.msra.mxu1 %v579_v15 }
 0x22e   :  { %v568_v19 = vpop.permute.xlu1 %567  ;;  %679 = vmatprep.subr.mxu0 %v574_v22 }
 0x22f   :  { %v569_v20 = vsel %vm171_vm4, %v566_v42, %v568_v19  ;;  %v572_v41 = vsel %vm171_vm4, %v568_v19, %v562_v32  ;;  %v550_v49 = vpop.permute.xlu0 %549 }
 0x230   :  { %v573_v13 = vmul.f32 %v572_v41, %v1196_v54  ;;  %v576_v23 = vmul.f32 %v569_v20, %v1203_v57 }
 0x232   :  { %750 = vmatprep.subr.mxu1 %v576_v23  ;;  %v548_v28 = vpop.permute.xlu1 %547  ;;  %680 = vmatpush1.msra.mxu0 %v573_v13 }
 0x233   :  { %v555_v58 = vsel %vm138_vm5, %v546_v55, %v548_v28  ;;  %v530_v31 = vpop.permute.xlu0 %529  ;;  %751 = vmatpush1.msra.mxu1 %v575_v30  ;;  %v554_v60 = vsel %vm138_vm5, %v548_v28, %v550_v49 }
 0x234   :  { %v558_v29 = vmul.f32 %v555_v58, %v1217_v9  ;;  %v559_v27 = vmul.f32 %v554_v60, %v1226_v37 }
 0x236   :  { %v552_v36 = vpop.permute.xlu1 %551  ;;  %681 = vmatprep.subr.mxu0 %v558_v29 }
 0x237   :  { %v553_v54 = vsel %vm138_vm5, %v550_v49, %v552_v36  ;;  %v556_v56 = vsel %vm138_vm5, %v552_v36, %v546_v55  ;;  %v534_v5 = vpop.permute.xlu0 %533 }
 0x238   :  { %v557_v57 = vmul.f32 %v556_v56, %v1222_v26  ;;  %v560_v34 = vmul.f32 %v553_v54, %v1229_v38 }
 0x23a   :  { %752 = vmatprep.subr.mxu1 %v560_v34  ;;  %v532_v9 = vpop.permute.xlu1 %531  ;;  %682 = vmatpush1.msra.mxu0 %v557_v57 }
 0x23b   :  { %v539_v63 = vsel %vm105_vm6, %v530_v31, %v532_v9  ;;  %753 = vmatpush1.msra.mxu1 %v559_v27  ;;  %v538_v35 = vsel %vm105_vm6, %v532_v9, %v534_v5  ;;  %v514_v26 = vpop.permute.xlu0 %513 }
 0x23c   :  { %v542_v6 = vmul.f32 %v539_v63, %v1243_v48  ;;  %v543_v24 = vmul.f32 %v538_v35, %v1252_v61 }
 0x23e   :  { %v536_v33 = vpop.permute.xlu1 %535  ;;  %683 = vmatprep.subr.mxu0 %v542_v6 }
 0x23f   :  { %v537_v38 = vsel %vm105_vm6, %v534_v5, %v536_v33  ;;  %v540_v37 = vsel %vm105_vm6, %v536_v33, %v530_v31  ;;  %v518_v51 = vpop.permute.xlu0 %517 }
 0x240   :  { %v541_v7 = vmul.f32 %v540_v37, %v1248_v59  ;;  %v544_v10 = vmul.f32 %v537_v38, %v1255_v62 }
 0x242   :  { %754 = vmatprep.subr.mxu1 %v544_v10  ;;  %v516_v48 = vpop.permute.xlu1 %515  ;;  %684 = vmatpush1.msra.mxu0 %v541_v7 }
 0x243   :  { %v523_v25 = vsel %vm72_vm7, %v514_v26, %v516_v48  ;;  %755 = vmatpush1.msra.mxu1 %v543_v24  ;;  %v522_v32 = vsel %vm72_vm7, %v516_v48, %v518_v51 }
 0x244   :  { %v526_v53 = vmul.f32 %v523_v25, %v1269_v39  ;;  %v645_v39 = vld [vmem:[%s1494_s4] sm:$0xff]  ;;  %v527_v14 = vmul.f32 %v522_v32, %v1278_v45  ;;  %s937_s4 = smov [#allocation7]  }
 0x245   :  { %s823_s20 = sshll.u32 %s937_s4, 4  ;;  %s824_s20 = int_to_ptr.vmem [resolvable:$true] %s823_s20 }
 0x246   :  { %v520_v12 = vpop.permute.xlu1 %519  ;;  %685 = vmatprep.subr.mxu0 %v526_v53  ;;  %s897_s21 = scalar_lea.vmem %s824_s20, 512  ;;  %p902_p11 = scmp.lt.s32.totalorder %s824_s20, %s824_s20 }
 0x247   :  { %v521_v59 = vsel %vm72_vm7, %v518_v51, %v520_v12  ;;  %v524_v61 = vsel %vm72_vm7, %v520_v12, %v514_v26  ;;  %p898_p10 = scmp.ne.s32.totalorder %s824_s20, %s897_s21  ;;  %p903_p12 = scmp.lt.s32.totalorder %s897_s21, %s897_s21 }
 0x248   :  { %v525_v62 = vmul.f32 %v524_v61, %v1275_v44  ;;  %v528_v40 = vmul.f32 %v521_v59, %v1281_v46 }
 0x249   :  { %p904_p13 = por %p903_p12, %p902_p11 }
 0x24a   :  { %686 = vmatpush1.msra.mxu0 %v525_v62  ;;  %756 = vmatprep.subr.mxu1 %v528_v40 }
 0x24b   :  { %839 = vmatmul.mubr.msk.f32.vlgmr.msra.gmra.mxu0 %vm355_vm8, %v645_v39  ;;  %757 = vmatpush1.msra.mxu1 %v527_v14  ;;  %p905_p0 = pnand %p904_p13, %p898_p10 }
 0x24c   :  { %840 = vmatmul.mubr.msk.f32.vlgmr.msra.gmra.mxu1 %vm355_vm8, %v645_v39  ;;  %v650_v52 = vpop.permute.xlu0 %649 }
 0x30b   :  { %v721_v8 = vpop.f32.mrf.mxu0 }
 0x30c   :  { %v722_v50 = vadd.f32 %v721_v8, %v650_v52  ;;  %v792_v11 = vpop.f32.mrf.mxu1 }
 0x30d   :  { %v793_v44 = vadd.f32 %v792_v11, %v650_v52  ;;  %v723_v42 = vpop.f32.mrf.mxu0 }
 0x30e   :  { %v797_v46 = vadd.f32 %v722_v50, %v981_v1  ;;  %v724_v43 = vadd.f32 %v723_v42, %v650_v52  ;;  %v794_v21 = vpop.f32.mrf.mxu1 }
 0x30f   :  { %v799_v18 = vadd.f32 %v793_v44, %v979_v0  ;;  %v795_v45 = vadd.f32 %v794_v21, %v650_v52 }
 0x310   :  { %vm801_vm13 = vcmp.gt.f32.partialorder %v797_v46, 0.0  ;;  %v805_v47 = vmul.f32 0.1, %v797_v46  ;;  %v798_v16 = vadd.f32 %v724_v43, %v989_v3 }
 0x311   :  { %vm803_vm14 = vcmp.gt.f32.partialorder %v799_v18, 0.0  ;;  %v807_v4 = vmul.f32 0.1, %v799_v18  ;;  %v800_v55 = vadd.f32 %v795_v45, %v987_v2 }
 0x312   :  { %v809_v15 = vsel %vm801_vm13, %v797_v46, %v805_v47  ;;  %vm802_vm15 = vcmp.gt.f32.partialorder %v798_v16, 0.0  ;;  %v806_v22 = vmul.f32 0.1, %v798_v16 }
 0x313   :  { %813 = vst [vmem:[#allocation7] sm:$0xff] %v809_v15  ;;  %v811_v1 = vsel %vm803_vm14, %v799_v18, %v807_v4  ;;  %vm804_vm0 = vcmp.gt.f32.partialorder %v800_v55, 0.0  ;;  %v808_v17 = vmul.f32 0.1, %v800_v55 }
 0x314   :  { %815 = vst [vmem:[#allocation7 + $0x10] sm:$0xff] %v811_v1  ;;  %v810_v0 = vsel %vm802_vm15, %v798_v16, %v806_v22 }
 0x315   :  { %814 = vst [vmem:[#allocation7 + $0x8] sm:$0xff] %v810_v0  ;;  %v812_v19 = vsel %vm804_vm0, %v800_v55, %v808_v17 }
 0x316   :  { %816 = vst [vmem:[#allocation7 + $0x18] sm:$0xff] %v812_v19 }
 0x317   :  { %908 = shalt.err (!%p905_p0)
}
 0x318   :  { %826 = dma.vmem_to_hbm [thread:$0]  %s824_s20, 512, %s1496_s6, [#allocation4]  }
 0x319   :  { %921 = dma.done.wait [#allocation4], 512  }
 0x31a   :  { %922 = vsyncadd [#allocation4], 4294966784 }
 0x31b   :  { %830 = vsyncpa [#allocation3], 1 }
 0x31c   :  { %831 = vsyncpa [#allocation6], 1 }
 0x31d   :  { %832 = vsyncpa [#allocation4], 1 }

</bundles_post_ra>
